<compile_context>
chip_gen: v7x
topology: tpu7x:2x2x1
jax: 0.10.0
libtpu: 0.0.40
codegen_flags: <defaults>
</compile_context>

<pallas_src>
import functools

import jax
import jax.numpy as jnp
from jax.experimental import pallas as pl
from jax.experimental.pallas import tpu as pltpu


def _round_up(v: int, m: int) -> int:
    return ((v + m - 1) // m) * m


def _cdiv(a: int, b: int) -> int:
    return -(-a // b)


def _vmem_budget_bytes() -> int:
    """~85% of physical per-core VMEM (v7x: ~54 MiB, v5e/v6e: ~109 MiB)."""
    cap = 64 * 2**20  # conservative fallback = v7x per-TensorCore VMEM
    try:
        cap = int(pltpu.get_tpu_info().vmem_capacity_bytes)
    except Exception:
        pass
    return int(cap * 0.85)


def _vmem_footprint(tm, d, th, d_out, x_bytes, w_bytes, resident_weights):
    """Estimate of kernel VMEM usage (includes f32 intermediates)."""
    bufs_w = 1 if resident_weights else 2  # Buffered(1) when resident
    io = 2 * tm * d * x_bytes + 2 * tm * d_out * x_bytes        # x / out tiles
    wts = bufs_w * (d * th * w_bytes + th * d_out * w_bytes
                    + 8 * th * 4 + 8 * d_out * 4)               # w1, w2, biases
    acc = tm * d_out * 4                                        # f32 accumulator
    tmp = 3 * tm * th * 4 + tm * d_out * 4                      # f32 h, GELU tmp, y
    return io + wts + acc + tmp


def _pick_row_tile(n: int, tm_target: int) -> int:
    tm_eff = min(tm_target, _round_up(n, 16))
    tm_eff = max(16, _round_up(tm_eff, 16))       # bf16 sublane packing (16,128)
    if tm_eff >= 128:
        tm_eff = _round_up(tm_eff, 128)           # full MXU row tiles
    steps = _cdiv(n, tm_eff)
    if steps > 1 and steps % 2 == 1:
        # prefer an even step count: v7x shards the "parallel" axis over 2 TCs
        alt = _round_up(_cdiv(n, steps + 1), 16)
        if alt >= 128:
            alt = _round_up(alt, 128)
        if alt >= 16 and _cdiv(n, alt) % 2 == 0:
            tm_eff = alt
    return tm_eff


def _residual_mlp_kernel(x_ref, w1_ref, b1_ref, w2_ref, b2_ref, o_ref, acc_ref,
                         *, add_residual: bool, approximate_gelu: bool):
    k = pl.program_id(1)

    @pl.when(k == 0)
    def _():
        acc_ref[...] = jnp.zeros_like(acc_ref)

    # MXU matmuls in the operands' native (bf16) dtype, f32 accumulation.
    x = x_ref[...]
    h = jnp.dot(x, w1_ref[...], preferred_element_type=jnp.float32)
    h = h + b1_ref[...].astype(jnp.float32)
    # approximate=True -> tanh GELU on the EUP (cheap, hidden under MXU work);
    # pass approximate=False for bit-fidelity with PyTorch nn.GELU (exact erf).
    h = jax.nn.gelu(h, approximate=approximate_gelu)
    acc_ref[...] += jnp.dot(h.astype(w2_ref.dtype), w2_ref[...],
                            preferred_element_type=jnp.float32)

    @pl.when(k == pl.num_programs(1) - 1)
    def _():
        y = acc_ref[...] + b2_ref[...].astype(jnp.float32)
        if add_residual:
            y = y + x.astype(jnp.float32)
        o_ref[...] = y.astype(o_ref.dtype)


def make_residual_mlp(w1, b1, w2, b2, *, tm=512, force_h_chunk=None,
                      approximate_gelu=True):
    """Build a jitted Residual(MLP) apply fn. Weight padding (hidden dim only)
    happens once here, outside the per-call hot path."""
    d, h = w1.shape
    h2, d_out = w2.shape
    assert h == h2
    b1 = jnp.reshape(b1, (1, h)).astype(jnp.float32)
    b2 = jnp.reshape(b2, (1, d_out)).astype(jnp.float32)

    budget = _vmem_budget_bytes()
    x_bytes = w1.dtype.itemsize  # activations assumed same width as weights
    w_bytes = w1.dtype.itemsize

    # ---- choose hidden-dim chunk (lane-dense, fits VMEM budget) -----------
    h_pad = _round_up(h, 128)
    th = h_pad
    if force_h_chunk is not None:
        th = min(_round_up(force_h_chunk, 128), h_pad)
    while th > 128 and _vmem_footprint(tm, d, th, d_out, x_bytes, w_bytes,
                                       th >= h_pad) > int(0.8 * budget):
        th = _round_up(max(th // 2, 128), 128)
    h_chunks = _cdiv(h_pad, th)
    h_full = th * h_chunks
    resident = (h_chunks == 1)

    # One-time parameter prep (zero padding of the hidden dim only).
    if h_full != h:
        w1 = jnp.pad(w1, ((0, 0), (0, h_full - h)))
        b1 = jnp.pad(b1, ((0, 0), (0, h_full - h)))
        w2 = jnp.pad(w2, ((0, h_full - h), (0, 0)))

    @jax.jit
    def apply(x, w1p, b1p, w2p, b2p):
        n, d_in = x.shape
        assert d_in == d
        # Residual.forward semantics: add only if shapes match (static here).
        add_residual = (x.shape == (n, d_out))
        if not add_residual:
            print(f"Warning: Residual connection shape mismatch: {x.shape} vs "
                  f"{(n, d_out)}. Skipping residual.")

        tm_eff = _pick_row_tile(n, tm)
        n_steps = _cdiv(n, tm_eff)  # ragged last block: Pallas masks it

        fp = _vmem_footprint(tm_eff, d, th, d_out, x.dtype.itemsize, w_bytes,
                             resident)
        vmem_limit = int(min(budget, max(fp * 5 // 4, 32 * 2**20)))

        # Single-buffer operands whose block index never changes.
        wmode = dict(pipeline_mode=pl.Buffered(1)) if resident else {}

        kernel = functools.partial(_residual_mlp_kernel,
                                   add_residual=add_residual,
                                   approximate_gelu=approximate_gelu)

        return pl.pallas_call(
            kernel,
            out_shape=jax.ShapeDtypeStruct((n, d_out), x.dtype),
            grid_spec=pltpu.PrefetchScalarGridSpec(
                num_scalar_prefetch=0,
                grid=(n_steps, h_chunks),
                in_specs=[
                    pl.BlockSpec((tm_eff, d), lambda i, k: (i, 0)),      # x rows
                    pl.BlockSpec((d, th), lambda i, k: (0, k), **wmode),  # w1
                    pl.BlockSpec((1, th), lambda i, k: (0, k), **wmode),  # b1
                    pl.BlockSpec((th, d_out), lambda i, k: (k, 0), **wmode),  # w2
                    pl.BlockSpec((1, d_out), lambda i, k: (0, 0),
                                 pipeline_mode=pl.Buffered(1)),            # b2
                ],
                out_specs=pl.BlockSpec((tm_eff, d_out), lambda i, k: (i, 0)),
                scratch_shapes=[pltpu.VMEM((tm_eff, d_out), jnp.float32)],
            ),
            compiler_params=pltpu.CompilerParams(
                dimension_semantics=("parallel", "arbitrary"),
                vmem_limit_bytes=vmem_limit),
        )(x, w1p, b1p, w2p, b2p)

    padded = (w1, b1, w2, b2)
    return lambda x: apply(x, *padded)


def _reference(x, w1, b1, w2, b2, *, approximate_gelu=True):
    h = (jnp.dot(x, w1, preferred_element_type=jnp.float32)
         + b1.astype(jnp.float32))
    h = jax.nn.gelu(h, approximate=approximate_gelu)
    y = (jnp.dot(h.astype(w2.dtype), w2, preferred_element_type=jnp.float32)
         + b2.astype(jnp.float32))
    if y.shape == x.shape:
        y = y + x.astype(jnp.float32)
    return y.astype(x.dtype)


if __name__ == "__main__":
    key = jax.random.PRNGKey(0)
    ks = jax.random.split(key, 10)

    # ---- Test 1: small shapes (resident-weights path, h_chunks == 1) ------
    batch, seq, hidden, inner = 2, 8, 32, 64
    n = batch * seq
    x = jax.random.normal(ks[0], (n, hidden), jnp.float32).astype(jnp.bfloat16)
    w1 = (0.05 * jax.random.normal(ks[1], (hidden, inner), jnp.float32)
          ).astype(jnp.bfloat16)
    b1 = 0.01 * jax.random.normal(ks[2], (1, inner), jnp.float32)
    w2 = (0.05 * jax.random.normal(ks[3], (inner, hidden), jnp.float32)
          ).astype(jnp.bfloat16)
    b2 = 0.01 * jax.random.normal(ks[4], (1, hidden), jnp.float32)

    mlp = make_residual_mlp(w1, b1, w2, b2)
    out = jax.block_until_ready(mlp(x))
    ref = _reference(x, w1, b1, w2, b2)
    assert out.shape == x.shape
    assert jnp.allclose(out.astype(jnp.float32), ref.astype(jnp.float32),
                        atol=2e-2, rtol=2e-2), "test 1 mismatch vs reference"

    # ---- Test 2: ragged rows + forced H-chunked accumulation path ---------
    n2, d2, hid2 = 200, 64, 384
    x2 = jax.random.normal(ks[5], (n2, d2), jnp.float32).astype(jnp.bfloat16)
    w1b = (0.05 * jax.random.normal(ks[6], (d2, hid2), jnp.float32)
           ).astype(jnp.bfloat16)
    b1b = 0.01 * jax.random.normal(ks[7], (1, hid2), jnp.float32)
    w2b = (0.05 * jax.random.normal(ks[8], (hid2, d2), jnp.float32)
           ).astype(jnp.bfloat16)
    b2b = 0.01 * jax.random.normal(ks[9], (1, d2), jnp.float32)

    mlp2 = make_residual_mlp(w1b, b1b, w2b, b2b, tm=128, force_h_chunk=128)
    out2 = jax.block_until_ready(mlp2(x2))
    ref2 = _reference(x2, w1b, b1b, w2b, b2b)
    assert out2.shape == x2.shape
    assert jnp.allclose(out2.astype(jnp.float32), ref2.astype(jnp.float32),
                        atol=2e-2, rtol=2e-2), "test 2 mismatch vs reference"

    print("KERNEL_OK")
</pallas_src>

<mosaic_0001>
module attributes {stable_mosaic.version = 11 : i64} {
  func.func @_residual_mlp_kernel(%arg0: i32, %arg1: i32, %arg2: memref<16x32xbf16, #tpu.memory_space<vmem>>, %arg3: memref<32x128xbf16, #tpu.memory_space<vmem>>, %arg4: memref<1x128xf32, #tpu.memory_space<vmem>>, %arg5: memref<128x32xbf16, #tpu.memory_space<vmem>>, %arg6: memref<1x32xf32, #tpu.memory_space<vmem>>, %arg7: memref<16x32xbf16, #tpu.memory_space<vmem>>, %arg8: memref<16x32xf32, #tpu.memory_space<vmem>>) attributes {dimension_semantics = [#tpu.dimension_semantics<parallel>, #tpu.dimension_semantics<arbitrary>], iteration_bounds = array<i64: 1, 1>, scalar_prefetch = 0 : i64, scratch_operands = 1 : i64, tpu.core_type = #tpu.core_type<tc>, window_params = [{transform_indices = @transform_0, window_bounds = array<i64: 16, 32>}, {pipeline_mode = #tpu.pipeline_mode<synchronous>, transform_indices = @transform_1, window_bounds = array<i64: 32, 128>}, {pipeline_mode = #tpu.pipeline_mode<synchronous>, transform_indices = @transform_2, window_bounds = array<i64: 1, 128>}, {pipeline_mode = #tpu.pipeline_mode<synchronous>, transform_indices = @transform_3, window_bounds = array<i64: 128, 32>}, {pipeline_mode = #tpu.pipeline_mode<synchronous>, transform_indices = @transform_4, window_bounds = array<i64: 1, 32>}, {transform_indices = @transform_5, window_bounds = array<i64: 16, 32>}]} {
    %c0_i32 = arith.constant 0 : i32
    %0 = arith.cmpi eq, %arg1, %c0_i32 : i32
    %1 = arith.extui %0 : i1 to i32
    %c0_i32_0 = arith.constant 0 : i32
    %2 = arith.cmpi ne, %1, %c0_i32_0 : i32
    scf.if %2 {
      %cst_19 = arith.constant 0.000000e+00 : f32
      %31 = vector.broadcast %cst_19 : f32 to vector<16x32xf32>
      %c0_20 = arith.constant 0 : index
      %c0_21 = arith.constant 0 : index
      %32 = vector.load %arg8[%c0_20, %c0_21] : memref<16x32xf32, #tpu.memory_space<vmem>>, vector<16x32xf32>
      tpu.vector_store %arg8[%c0_20, %c0_21], %31 {strides = array<i32>} : memref<16x32xf32, #tpu.memory_space<vmem>>, vector<16x32xf32>,
    } else {
    }
    %c0 = arith.constant 0 : index
    %c0_1 = arith.constant 0 : index
    %3 = vector.load %arg2[%c0, %c0_1] : memref<16x32xbf16, #tpu.memory_space<vmem>>, vector<16x32xbf16>
    %c0_2 = arith.constant 0 : index
    %c0_3 = arith.constant 0 : index
    %4 = vector.load %arg3[%c0_2, %c0_3] : memref<32x128xbf16, #tpu.memory_space<vmem>>, vector<32x128xbf16>
    %cst = arith.constant dense<0.000000e+00> : vector<16x128xf32>
    %5 = tpu.matmul %3, %4, %cst {dimension_numbers = #tpu.dot_dimension_numbers<[1], [0], [0], [1], [0, 0, 1, 1], [], []>} : vector<16x32xbf16>, vector<32x128xbf16>, vector<16x128xf32> -> vector<16x128xf32>
    %c0_4 = arith.constant 0 : index
    %c0_5 = arith.constant 0 : index
    %6 = vector.load %arg4[%c0_4, %c0_5] : memref<1x128xf32, #tpu.memory_space<vmem>>, vector<1x128xf32>
    %7 = vector.broadcast %6 : vector<1x128xf32> to vector<16x128xf32>
    %8 = arith.addf %5, %7 : vector<16x128xf32>
    %9 = arith.mulf %8, %8 : vector<16x128xf32>
    %10 = arith.mulf %8, %9 : vector<16x128xf32>
    %cst_6 = arith.constant 4.471500e-02 : f32
    %11 = vector.broadcast %cst_6 : f32 to vector<16x128xf32>
    %12 = arith.mulf %11, %10 : vector<16x128xf32>
    %13 = arith.addf %8, %12 : vector<16x128xf32>
    %cst_7 = arith.constant 0.797884583 : f32
    %14 = vector.broadcast %cst_7 : f32 to vector<16x128xf32>
    %15 = arith.mulf %14, %13 : vector<16x128xf32>
    %16 = math.tanh %15 : vector<16x128xf32>
    %cst_8 = arith.constant 1.000000e+00 : f32
    %17 = vector.broadcast %cst_8 : f32 to vector<16x128xf32>
    %18 = arith.addf %17, %16 : vector<16x128xf32>
    %cst_9 = arith.constant 5.000000e-01 : f32
    %19 = vector.broadcast %cst_9 : f32 to vector<16x128xf32>
    %20 = arith.mulf %19, %18 : vector<16x128xf32>
    %21 = arith.mulf %8, %20 : vector<16x128xf32>
    %c0_10 = arith.constant 0 : index
    %c0_11 = arith.constant 0 : index
    %22 = vector.load %arg8[%c0_10, %c0_11] : memref<16x32xf32, #tpu.memory_space<vmem>>, vector<16x32xf32>
    %23 = arith.truncf %21 : vector<16x128xf32> to vector<16x128xbf16>
    %c0_12 = arith.constant 0 : index
    %c0_13 = arith.constant 0 : index
    %24 = vector.load %arg5[%c0_12, %c0_13] : memref<128x32xbf16, #tpu.memory_space<vmem>>, vector<128x32xbf16>
    %cst_14 = arith.constant dense<0.000000e+00> : vector<16x32xf32>
    %25 = tpu.matmul %23, %24, %cst_14 {dimension_numbers = #tpu.dot_dimension_numbers<[1], [0], [0], [1], [0, 0, 1, 1], [], []>} : vector<16x128xbf16>, vector<128x32xbf16>, vector<16x32xf32> -> vector<16x32xf32>
    %26 = arith.addf %22, %25 : vector<16x32xf32>
    %c0_15 = arith.constant 0 : index
    %c0_16 = arith.constant 0 : index
    %27 = vector.load %arg8[%c0_15, %c0_16] : memref<16x32xf32, #tpu.memory_space<vmem>>, vector<16x32xf32>
    tpu.vector_store %arg8[%c0_15, %c0_16], %26 {strides = array<i32>} : memref<16x32xf32, #tpu.memory_space<vmem>>, vector<16x32xf32>,
    %c0_i32_17 = arith.constant 0 : i32
    %28 = arith.cmpi eq, %arg1, %c0_i32_17 : i32
    %29 = arith.extui %28 : i1 to i32
    %c0_i32_18 = arith.constant 0 : i32
    %30 = arith.cmpi ne, %29, %c0_i32_18 : i32
    scf.if %30 {
      %c0_19 = arith.constant 0 : index
      %c0_20 = arith.constant 0 : index
      %31 = vector.load %arg8[%c0_19, %c0_20] : memref<16x32xf32, #tpu.memory_space<vmem>>, vector<16x32xf32>
      %c0_21 = arith.constant 0 : index
      %c0_22 = arith.constant 0 : index
      %32 = vector.load %arg6[%c0_21, %c0_22] : memref<1x32xf32, #tpu.memory_space<vmem>>, vector<1x32xf32>
      %33 = vector.broadcast %32 : vector<1x32xf32> to vector<16x32xf32>
      %34 = arith.addf %31, %33 : vector<16x32xf32>
      %35 = arith.extf %3 : vector<16x32xbf16> to vector<16x32xf32>
      %36 = arith.addf %34, %35 : vector<16x32xf32>
      %37 = arith.truncf %36 : vector<16x32xf32> to vector<16x32xbf16>
      %c0_23 = arith.constant 0 : index
      %c0_24 = arith.constant 0 : index
      %38 = vector.load %arg7[%c0_23, %c0_24] : memref<16x32xbf16, #tpu.memory_space<vmem>>, vector<16x32xbf16>
      tpu.vector_store %arg7[%c0_23, %c0_24], %37 {strides = array<i32>} : memref<16x32xbf16, #tpu.memory_space<vmem>>, vector<16x32xbf16>,
    } else {
    }
    return
  }
  func.func @transform_0(%arg0: i32, %arg1: i32) -> (i32, i32) {
    %c0_i32 = arith.constant 0 : i32
    %c0_i32_0 = arith.constant 0 : i32
    return %arg0, %c0_i32 : i32, i32
  }
  func.func @transform_1(%arg0: i32, %arg1: i32) -> (i32, i32) {
    %c0_i32 = arith.constant 0 : i32
    %c0_i32_0 = arith.constant 0 : i32
    return %c0_i32, %arg1 : i32, i32
  }
  func.func @transform_2(%arg0: i32, %arg1: i32) -> (i32, i32) {
    %c0_i32 = arith.constant 0 : i32
    %c0_i32_0 = arith.constant 0 : i32
    return %c0_i32, %arg1 : i32, i32
  }
  func.func @transform_3(%arg0: i32, %arg1: i32) -> (i32, i32) {
    %c0_i32 = arith.constant 0 : i32
    %c0_i32_0 = arith.constant 0 : i32
    return %arg1, %c0_i32 : i32, i32
  }
  func.func @transform_4(%arg0: i32, %arg1: i32) -> (i32, i32) {
    %c0_i32 = arith.constant 0 : i32
    %c0_i32_0 = arith.constant 0 : i32
    %c0_i32_1 = arith.constant 0 : i32
    return %c0_i32, %c0_i32_0 : i32, i32
  }
  func.func @transform_5(%arg0: i32, %arg1: i32) -> (i32, i32) {
    %c0_i32 = arith.constant 0 : i32
    %c0_i32_0 = arith.constant 0 : i32
    return %arg0, %c0_i32 : i32, i32
  }
}

</mosaic_0001>

<bundles_post_ra>
// kernel: apply.1
= control target key start
LH: loop header
LB: loop body
LE: loop exit
PB: predicated region body
PF: predicated region fallthrough
CT: control target
= control target key end

     0   :  { %v382_v1 = vmov 0.0   ;;  %vm383_vm0 = vmmov 0   ;;  %vm26_vm1 = vcmask 261120   ;;  %s478_s0 = inlined_call_operand.vmem [shape: bf16[16,32], index: 0, kind: input, shape index: {}]   ;;  %s479_s1 = inlined_call_operand.vmem [shape: bf16[32,128], index: 1, kind: input, shape index: {}]   ;;  %s480_s2 = inlined_call_operand.vmem [shape: f32[1,128], index: 2, kind: input, shape index: {}]   ;;  %s481_s3 = inlined_call_operand.vmem [shape: bf16[128,32], index: 3, kind: input, shape index: {}]   ;;  %s482_s4 = inlined_call_operand.vmem [shape: f32[1,32], index: 4, kind: input, shape index: {}]   ;;  %s483_s5 = inlined_call_operand.hbm [shape: bf16[16,32], index: 5, kind: output, shape index: {}]  }
   0x1   :  { %v342_v0 = vld [vmem:[%s479_s1] sm:$0xff]   ;;  %309 = vmatprep.subr.bf16.mxu0 %v382_v1  ;;  %317 = vmatprep.subr.bf16.mxu1 %v382_v1  ;;  %v343_v2 = vld [vmem:[%s479_s1 + $0x8] sm:$0xff]   ;;  %27 = vst.msk [vmem:[#allocation2] sm:$0xff] %vm26_vm1, %v382_v1  ;;  %28 = vst.msk [vmem:[#allocation2 + $0x8] sm:$0xff] %vm26_vm1, %v382_v1 }
   0x2   :  { %310 = vmatpush3.bf16.msra.mxu0 %v342_v0  ;;  %313 = vmatprep.mubr.msk.bf16.mxu0 %vm383_vm0, %v382_v1  ;;  %v426_v3 = vld [vmem:[%s478_s0] sm:$0xff]  }
   0x3   :  { %311 = vmatprep.subr.bf16.mxu0 %v382_v1  ;;  %333 = vmatprep.mubr.msk.bf16.mxu1 %vm383_vm0, %v382_v1 }
   0x6   :  { %312 = vmatpush3.bf16.msra.mxu0 %v343_v2 }
   0x7   :  { %10 = vsyncpa [#allocation4], 0  ;;  %v345_v4 = vld [vmem:[%s481_s3] sm:$0xff]   ;;  %v346_v5 = vld [vmem:[%s481_s3 + $0x8] sm:$0xff]   ;;  %v248_v47 = vunpack.c.l.bf16 %v426_v3  ;;  %v249_v49 = vunpack.c.h.bf16 %v426_v3  ;;  %s384_s15 = smov [#allocation3]   ;;  %vm260_vm2 = vcmask 257024  }
   0x8   :  { %318 = vmatpush3.bf16.msra.mxu1 %v345_v4  ;;  %v347_v6 = vld [vmem:[%s481_s3 + $0x10] sm:$0xff]   ;;  %v348_v7 = vld [vmem:[%s481_s3 + $0x18] sm:$0xff]   ;;  %v349_v8 = vld [vmem:[%s481_s3 + $0x20] sm:$0xff]   ;;  %s268_s16 = sshll.u32 %s384_s15, 4  ;;  %s269_s16 = int_to_ptr.vmem [resolvable:$true] %s268_s16 }
   0x9   :  { %314 = vmatmul.mubr.msk.bf16.vlgmr.msra.gmra.mrb[0].mxu0 %vm26_vm1, %v426_v3  ;;  %319 = vmatprep.subr.bf16.mxu1 %v382_v1  ;;  %v350_v9 = vld [vmem:[%s481_s3 + $0x28] sm:$0xff]   ;;  %v351_v10 = vld [vmem:[%s481_s3 + $0x30] sm:$0xff]   ;;  %v352_v11 = vld [vmem:[%s481_s3 + $0x38] sm:$0xff]   ;;  %s358_s17 = scalar_lea.vmem %s269_s16, 128  ;;  %p363_p1 = scmp.lt.s32.totalorder %s269_s16, %s269_s16 }
   0xa   :  { %v279_v12 = vld [vmem:[%s480_s2] ss:$0 sm:$0xff]  ;;  %v123_v40 = vld [vmem:[#allocation2 + $0x8] sm:$0xff]  ;;  %p359_p0 = scmp.ne.s32.totalorder %s269_s16, %s358_s17  ;;  %p364_p2 = scmp.lt.s32.totalorder %s358_s17, %s358_s17 }
   0xb   :  { %v122_v38 = vld [vmem:[#allocation2] sm:$0xff] }
   0xc   :  { %320 = vmatpush3.bf16.msra.mxu1 %v346_v5  ;;  %v292_v46 = vld [vmem:[%s482_s4] ss:$0 sm:$0xff]  ;;  %p365_p3 = por %p364_p2, %p363_p1 }
   0xd   :  { %321 = vmatprep.subr.bf16.mxu1 %v382_v1 }
   0xe   :  { %p366_p4 = pnand %p365_p3, %p359_p0 }
  0x10   :  { %322 = vmatpush3.bf16.msra.mxu1 %v347_v6 }
  0x11   :  { %323 = vmatprep.subr.bf16.mxu1 %v382_v1 }
  0x14   :  { %324 = vmatpush3.bf16.msra.mxu1 %v348_v7 }
  0x15   :  { %325 = vmatprep.subr.bf16.mxu1 %v382_v1 }
  0x18   :  { %326 = vmatpush3.bf16.msra.mxu1 %v349_v8 }
  0x19   :  { %327 = vmatprep.subr.bf16.mxu1 %v382_v1 }
  0x1c   :  { %328 = vmatpush3.bf16.msra.mxu1 %v350_v9 }
  0x1d   :  { %329 = vmatprep.subr.bf16.mxu1 %v382_v1 }
  0x20   :  { %330 = vmatpush3.bf16.msra.mxu1 %v351_v10 }
  0x21   :  { %331 = vmatprep.subr.bf16.mxu1 %v382_v1 }
  0x24   :  { %332 = vmatpush3.bf16.msra.mxu1 %v352_v11 }
  0xdc   :  { %v97_v13 = vpop.f32.mrb[0].mxu0 }
  0xdd   :  { %v98_v14 = vadd.f32 %v279_v12, %v97_v13  ;;  %v315_v15 = vpop.f32.mrb[1].mxu0 }
  0xde   :  { %v100_v16 = vpop.f32.mrb[2].mxu0 }
  0xdf   :  { %v104_v17 = vmul.f32 %v98_v14, %v98_v14  ;;  %v101_v18 = vadd.f32 %v279_v12, %v100_v16  ;;  %v316_v19 = vpop.f32.mrb[3].mxu0 }
  0xe1   :  { %v106_v20 = vmul.f32 %v104_v17, %v98_v14  ;;  %v105_v21 = vmul.f32 %v101_v18, %v101_v18 }
  0xe3   :  { %v108_v22 = vmul.f32 0.044715, %v106_v20  ;;  %v107_v23 = vmul.f32 %v105_v21, %v101_v18 }
  0xe5   :  { %v110_v24 = vadd.f32 %v108_v22, %v98_v14  ;;  %v109_v25 = vmul.f32 0.044715, %v107_v23 }
  0xe7   :  { %v112_v26 = vmul.f32 0.7978846, %v110_v24  ;;  %v111_v27 = vadd.f32 %v109_v25, %v101_v18 }
  0xe9   :  { %354 = vtanh.f32 %v112_v26  ;;  %v113_v28 = vmul.f32 0.7978846, %v111_v27 }
  0xeb   :  { %356 = vtanh.f32 %v113_v28 }
  0xf3   :  { %v355_v29 = vpop.eup %354 }
  0xf4   :  { %v116_v30 = vadd.f32 1.0, %v355_v29 }
  0xf5   :  { %v357_v31 = vpop.eup %356 }
  0xf6   :  { %v117_v32 = vadd.f32 1.0, %v357_v31  ;;  %v118_v33 = vmul.f32 0.5, %v116_v30 }
  0xf8   :  { %v119_v34 = vmul.f32 0.5, %v117_v32  ;;  %v120_v35 = vmul.f32 %v118_v33, %v98_v14 }
  0xfa   :  { %v121_v36 = vmul.f32 %v119_v34, %v101_v18 }
  0xfc   :  { %v124_v37 = vpack.c.bf16 %v121_v36, %v120_v35 }
  0xfe   :  { %334 = vmatmul.mubr.bf16.vlgmr.msra.gmra.mrb[0].mxu1 %v124_v37 }
 0x1d1   :  { %v223_v39 = vpop.f32.mrb[0].mxu1 }
 0x1d2   :  { %v230_v41 = vadd.f32 %v223_v39, %v122_v38  ;;  %v335_v42 = vpop.f32.mrb[1].mxu1 }
 0x1d3   :  { %v226_v43 = vpop.f32.mrb[2].mxu1 }
 0x1d4   :  { %232 = vst.msk [vmem:[#allocation2] sm:$0xff] %vm26_vm1, %v230_v41  ;;  %v231_v44 = vadd.f32 %v226_v43, %v123_v40  ;;  %v336_v45 = vpop.f32.mrb[3].mxu1 }
 0x1d6   :  { %233 = vst.msk [vmem:[#allocation2 + $0x8] sm:$0xff] %vm26_vm1, %v231_v44 }
 0x1db   :  { %v237_v48 = vld [vmem:[#allocation2] sm:$0xff] }
 0x1dc   :  { %v246_v50 = vadd.f32 %v292_v46, %v237_v48 }
 0x1dd   :  { %v238_v51 = vld [vmem:[#allocation2 + $0x8] sm:$0xff] }
 0x1de   :  { %v247_v52 = vadd.f32 %v292_v46, %v238_v51  ;;  %v250_v53 = vadd.f32 %v248_v47, %v246_v50 }
 0x1e0   :  { %v251_v54 = vadd.f32 %v249_v49, %v247_v52  ;;  %v295_v55 = vpack.c.bf16 %v250_v53, %v250_v53 }
 0x1e2   :  { %v296_v56 = vpack.c.bf16 %v251_v54, %v251_v54  ;;  %261 = vst.msk [vmem:[#allocation3] sm:$0xf] %vm260_vm2, %v295_v55 }
 0x1e4   :  { %262 = vst.msk [vmem:[#allocation3 + $0x4] sm:$0xf] %vm260_vm2, %v296_v56 }
 0x1e5   :  { %369 = shalt.err (!%p366_p4)
}
 0x1e6   :  { %s370_s19 = scalar_lea.hbm %s483_s5, 128 }
 0x1e7   :  { %p371_p5 = scmp.ne.s32.totalorder %s483_s5, %s370_s19  ;;  %p374_p6 = scmp.lt.u32.totalorder %s370_s19, %s483_s5 }
 0x1e9   :  { %p376_p7 = pnand %p374_p6, %p371_p5 }
 0x1eb   :  { %379 = shalt.err (!%p376_p7)
}
 0x1ec   :  { %s385_s1 = smov 64   ;;  %s386_s24 = smov 4  }
 0x1ed   :  { %274 = dma.vmem_to_hbm [thread:$0]  %s269_s16, 128, %s483_s5, [#allocation4], %s385_s1, %s385_s1, %s386_s24  }
 0x1ee   :  { %380 = dma.done.wait [#allocation4], 128  }
 0x1ef   :  { %381 = vsyncadd [#allocation4], 4294967168 }
 0x1f0   :  { %278 = vsyncpa [#allocation4], 1 }

</bundles_post_ra>
